<compile_context>
chip_gen: v5e
topology: v5e:2x2
jax: 0.10.0
libtpu: 0.0.40
codegen_flags: <defaults>
</compile_context>

<pallas_src>
import functools

import jax
import jax.numpy as jnp
from jax.experimental import pallas as pl
from jax.experimental.pallas import tpu as pltpu


def _posconv_kernel(x_ref, w_ref, b_ref, o_ref, *, rows_per_tile, n_row_tiles,
                    img_rows, chans):
    # x_ref: (H, W*C)    full-image slab for this batch element
    # w_ref: (9, 1, W*C) depthwise 3x3 weights, residual folded into tap 4,
    #                    column zero-padding folded in as lane masks
    # b_ref: (1, W*C)    bias (already tiled per column)
    # o_ref: (TH, W*C)   output row-tile
    TH = rows_per_tile
    WC = x_ref.shape[-1]
    ls = chans % WC             # lane roll giving "input column j-1"
    rs = (WC - chans) % WC      # lane roll giving "input column j+1"
    f32 = jnp.float32

    if n_row_tiles == 1:
        # Single row-tile per image: static full load, borders are zeros.
        x_mid = x_ref[...].astype(f32)                              # (TH, WC)
        prev_row = jnp.zeros((1, WC), f32)
        next_row = jnp.zeros((1, WC), f32)
    else:
        h = pl.program_id(1)
        r0 = pl.multiple_of(h * TH, TH)                 # TH % 8 == 0 enforced
        x_mid = x_ref[pl.ds(r0, TH), :].astype(f32)                 # (TH, WC)
        # Row just above / below this tile (clamped, masked at image border).
        prev_row = x_ref[pl.ds(jnp.maximum(r0 - 1, 0), 1), :].astype(f32)
        prev_row = jnp.where(h > 0, prev_row, jnp.zeros_like(prev_row))
        next_row = x_ref[pl.ds(jnp.minimum(r0 + TH, img_rows - 1), 1), :]
        next_row = next_row.astype(f32)
        next_row = jnp.where(h < pl.num_programs(1) - 1, next_row,
                             jnp.zeros_like(next_row))

    # Vertical neighbours via sublane rolls; only the wrapped row is patched.
    row = jax.lax.broadcasted_iota(jnp.int32, (TH, 1), 0)
    x_up = jnp.where(row == 0, prev_row, pltpu.roll(x_mid, 1, axis=0))
    x_dn = jnp.where(row == TH - 1, next_row,
                     pltpu.roll(x_mid, (TH - 1) % TH, axis=0))

    # 9 taps; bias folded into the first add, column masks pre-folded into w.
    acc = x_mid * w_ref[4] + b_ref[...]
    acc = acc + pltpu.roll(x_mid, ls, axis=1) * w_ref[3]
    acc = acc + pltpu.roll(x_mid, rs, axis=1) * w_ref[5]
    acc = acc + x_up * w_ref[1]
    acc = acc + pltpu.roll(x_up, ls, axis=1) * w_ref[0]
    acc = acc + pltpu.roll(x_up, rs, axis=1) * w_ref[2]
    acc = acc + x_dn * w_ref[7]
    acc = acc + pltpu.roll(x_dn, ls, axis=1) * w_ref[6]
    acc = acc + pltpu.roll(x_dn, rs, axis=1) * w_ref[8]

    o_ref[...] = acc.astype(o_ref.dtype)


def _choose_rows_per_tile(H, B, override=None):
    """Rows per output tile: full H unless B == 1 and H splits into mult-of-8
    chunks (gives v7x's second TensorCore work and deepens the pipeline)."""
    if override is not None:
        th = int(override)
        if H % th != 0 or (th != H and th % 8 != 0):
            raise ValueError("rows_per_tile must divide H and be a multiple "
                             "of 8 (or equal H)")
        return th
    if B >= 2:
        return H
    cands = [th for th in range(8, H, 8) if H % th == 0]
    return max(cands) if cands else H


def pos_conv(x_tokens, size, weight, bias, *, rows_per_tile=None):
    """x_tokens: (B, N, C); size=(H, W); weight: (C, 1, 3, 3); bias: (C,)."""
    H, W = size
    B, N, C = x_tokens.shape
    assert N == H * W, "N must equal H*W"
    WC = W * C

    # tokens -> (B, H, W*C): pure metadata reshape (row-major layouts match).
    x_img = x_tokens.reshape(B, H, WC)

    # Depthwise weight (C,1,3,3) -> (3,3,C); fold the stride-1 residual into
    # the centre tap; fold the zero padding of columns 0 / W-1 into per-lane
    # masks; flatten to (9, 1, W*C) with lane index m = j*C + c.
    w_kkc = jnp.transpose(weight[:, 0, :, :], (1, 2, 0)).astype(jnp.float32)
    w_kkc = w_kkc.at[1, 1, :].add(1.0)
    col = jnp.arange(W)
    col_mask = jnp.stack([col > 0, jnp.ones((W,), bool), col < W - 1],
                         axis=0).astype(jnp.float32)              # (3=dw, W)
    wq = col_mask[None, :, :, None] * w_kkc[:, :, None, :]        # (3,3,W,C)
    wq = wq.reshape(9, 1, WC)
    b_flat = jnp.tile(bias.astype(jnp.float32), W).reshape(1, WC)

    TH = _choose_rows_per_tile(H, B, rows_per_tile)
    nH = H // TH

    kernel = functools.partial(_posconv_kernel, rows_per_tile=TH,
                               n_row_tiles=nH, img_rows=H, chans=C)

    itemsize = jnp.dtype(x_tokens.dtype).itemsize
    # Double-buffered in/out blocks + weights + f32 working copies + margin.
    need = (2 * (H * WC * itemsize + TH * WC * itemsize)
            + 2 * (wq.size * 4 + b_flat.size * 4)
            + 8 * TH * WC * 4 + (4 << 20))
    vmem_limit = int(min(max(need, 32 << 20), 100 << 20))

    flops = 19 * B * H * W * C                       # 9 FMAs + bias per output
    io_bytes = 2 * B * H * WC * itemsize + wq.size * 4 + b_flat.size * 4

    out_img = pl.pallas_call(
        kernel,
        out_shape=jax.ShapeDtypeStruct((B, H, WC), x_tokens.dtype),
        grid_spec=pltpu.PrefetchScalarGridSpec(
            num_scalar_prefetch=0,
            grid=(B, nH),
            in_specs=[
                # Full-H slab, block index constant along h -> DMA'd once per b.
                pl.BlockSpec((None, H, WC), lambda b, h: (b, 0, 0)),
                pl.BlockSpec((9, 1, WC), lambda b, h: (0, 0, 0)),
                pl.BlockSpec((1, WC), lambda b, h: (0, 0)),
            ],
            out_specs=pl.BlockSpec((None, TH, WC), lambda b, h: (b, h, 0)),
        ),
        compiler_params=pltpu.CompilerParams(
            dimension_semantics=("parallel", "parallel"),
            vmem_limit_bytes=vmem_limit),
        cost_estimate=pl.CostEstimate(
            flops=int(flops), transcendentals=0, bytes_accessed=int(io_bytes)),
    )(x_img, wq, b_flat)

    return out_img.reshape(B, N, C)


def _reference(x_tokens, size, weight, bias):
    """Pure-JAX reference (lax depthwise conv) for validation."""
    H, W = size
    B, N, C = x_tokens.shape
    x_nchw = jnp.transpose(x_tokens, (0, 2, 1)).reshape(B, C, H, W)
    y = jax.lax.conv_general_dilated(
        x_nchw, weight, window_strides=(1, 1), padding=((1, 1), (1, 1)),
        dimension_numbers=("NCHW", "OIHW", "NCHW"), feature_group_count=C)
    y = y + bias[None, :, None, None]
    y = y + x_nchw
    return jnp.transpose(y.reshape(B, C, N), (0, 2, 1))


if __name__ == "__main__":
    key = jax.random.PRNGKey(0)
    kx, kw, kb, kx2 = jax.random.split(key, 4)

    # Shared depthwise weights: PosConv(in_chans=C, embed_dim=C, stride=1).
    C = 32
    weight = 0.1 * jax.random.normal(kw, (C, 1, 3, 3), dtype=jnp.float32)
    bias = 0.01 * jax.random.normal(kb, (C,), dtype=jnp.float32)

    # Case 1: B=2, 8x8 image -> single row-tile per image (lane dim = 256).
    B, H, W = 2, 8, 8
    x = jax.random.normal(kx, (B, H * W, C), dtype=jnp.float32)
    out = jax.block_until_ready(pos_conv(x, (H, W), weight, bias))
    ref = _reference(x, (H, W), weight, bias)
    assert out.shape == (B, H * W, C)
    assert jnp.allclose(out, ref, atol=1e-4, rtol=1e-4), "case-1 mismatch"

    # Case 2: B=1, 16x8 image with two row-tiles -> exercises the in-kernel
    # halo-row path and the multi-step grid (v7x second-core coverage).
    B2, H2, W2 = 1, 16, 8
    x2 = jax.random.normal(kx2, (B2, H2 * W2, C), dtype=jnp.float32)
    out2 = jax.block_until_ready(
        pos_conv(x2, (H2, W2), weight, bias, rows_per_tile=8))
    ref2 = _reference(x2, (H2, W2), weight, bias)
    assert jnp.allclose(out2, ref2, atol=1e-4, rtol=1e-4), "case-2 mismatch"

    print("KERNEL_OK")
</pallas_src>

<mosaic_0001>
module attributes {stable_mosaic.version = 11 : i64} {
  func.func @_posconv_kernel(%arg0: i32, %arg1: i32, %arg2: memref<1x8x256xf32, #tpu.memory_space<vmem>>, %arg3: memref<9x1x256xf32, #tpu.memory_space<vmem>>, %arg4: memref<1x256xf32, #tpu.memory_space<vmem>>, %arg5: memref<1x8x256xf32, #tpu.memory_space<vmem>>) attributes {dimension_semantics = [#tpu.dimension_semantics<parallel>, #tpu.dimension_semantics<parallel>], iteration_bounds = array<i64: 2, 1>, scalar_prefetch = 0 : i64, scratch_operands = 0 : i64, tpu.core_type = #tpu.core_type<tc>, window_params = [{transform_indices = @transform_0, window_bounds = array<i64: 1, 8, 256>}, {pipeline_mode = #tpu.pipeline_mode<synchronous>, transform_indices = @transform_1, window_bounds = array<i64: 9, 1, 256>}, {pipeline_mode = #tpu.pipeline_mode<synchronous>, transform_indices = @transform_2, window_bounds = array<i64: 1, 256>}, {transform_indices = @transform_3, window_bounds = array<i64: 1, 8, 256>}]} {
    %c0 = arith.constant 0 : index
    %c0_0 = arith.constant 0 : index
    %c0_1 = arith.constant 0 : index
    %0 = vector.load %arg2[%c0, %c0_0, %c0_1] : memref<1x8x256xf32, #tpu.memory_space<vmem>>, vector<1x8x256xf32>
    %1 = vector.shape_cast %0 : vector<1x8x256xf32> to vector<8x256xf32>
    %cst = arith.constant 0.000000e+00 : f32
    %2 = vector.broadcast %cst : f32 to vector<1x256xf32>
    %cst_2 = arith.constant 0.000000e+00 : f32
    %3 = vector.broadcast %cst_2 : f32 to vector<1x256xf32>
    %4 = tpu.iota {dimensions = array<i32: 0>} : vector<8x1xi32>
    %c0_i32 = arith.constant 0 : i32
    %5 = vector.broadcast %c0_i32 : i32 to vector<8x1xi32>
    %6 = arith.cmpi eq, %4, %5 : vector<8x1xi32>
    %c1_i32 = arith.constant 1 : i32
    %7 = tpu.dynamic_rotate %1 by %c1_i32 dim 0 : vector<8x256xf32>, i32 -> vector<8x256xf32>
    %8 = vector.shape_cast %6 : vector<8x1xi1> to vector<8x1xi1>
    %9 = vector.broadcast %8 : vector<8x1xi1> to vector<8x256xi1>
    %10 = vector.shape_cast %2 : vector<1x256xf32> to vector<1x256xf32>
    %11 = vector.broadcast %10 : vector<1x256xf32> to vector<8x256xf32>
    %12 = arith.select %9, %11, %7 : vector<8x256xi1>, vector<8x256xf32>
    %c7_i32 = arith.constant 7 : i32
    %13 = vector.broadcast %c7_i32 : i32 to vector<8x1xi32>
    %14 = arith.cmpi eq, %4, %13 : vector<8x1xi32>
    %c7_i32_3 = arith.constant 7 : i32
    %15 = tpu.dynamic_rotate %1 by %c7_i32_3 dim 0 : vector<8x256xf32>, i32 -> vector<8x256xf32>
    %16 = vector.shape_cast %14 : vector<8x1xi1> to vector<8x1xi1>
    %17 = vector.broadcast %16 : vector<8x1xi1> to vector<8x256xi1>
    %18 = vector.shape_cast %3 : vector<1x256xf32> to vector<1x256xf32>
    %19 = vector.broadcast %18 : vector<1x256xf32> to vector<8x256xf32>
    %20 = arith.select %17, %19, %15 : vector<8x256xi1>, vector<8x256xf32>
    %c4 = arith.constant 4 : index
    %c0_4 = arith.constant 0 : index
    %c0_5 = arith.constant 0 : index
    %21 = vector.load %arg3[%c4, %c0_4, %c0_5] : memref<9x1x256xf32, #tpu.memory_space<vmem>>, vector<1x1x256xf32>
    %22 = vector.shape_cast %21 : vector<1x1x256xf32> to vector<1x256xf32>
    %23 = vector.broadcast %22 : vector<1x256xf32> to vector<8x256xf32>
    %24 = arith.mulf %1, %23 : vector<8x256xf32>
    %c0_6 = arith.constant 0 : index
    %c0_7 = arith.constant 0 : index
    %25 = vector.load %arg4[%c0_6, %c0_7] : memref<1x256xf32, #tpu.memory_space<vmem>>, vector<1x256xf32>
    %26 = vector.broadcast %25 : vector<1x256xf32> to vector<8x256xf32>
    %27 = arith.addf %24, %26 : vector<8x256xf32>
    %c32_i32 = arith.constant 32 : i32
    %28 = tpu.dynamic_rotate %1 by %c32_i32 dim 1 : vector<8x256xf32>, i32 -> vector<8x256xf32>
    %c3 = arith.constant 3 : index
    %c0_8 = arith.constant 0 : index
    %c0_9 = arith.constant 0 : index
    %29 = vector.load %arg3[%c3, %c0_8, %c0_9] : memref<9x1x256xf32, #tpu.memory_space<vmem>>, vector<1x1x256xf32>
    %30 = vector.shape_cast %29 : vector<1x1x256xf32> to vector<1x256xf32>
    %31 = vector.broadcast %30 : vector<1x256xf32> to vector<8x256xf32>
    %32 = arith.mulf %28, %31 : vector<8x256xf32>
    %33 = arith.addf %27, %32 : vector<8x256xf32>
    %c224_i32 = arith.constant 224 : i32
    %34 = tpu.dynamic_rotate %1 by %c224_i32 dim 1 : vector<8x256xf32>, i32 -> vector<8x256xf32>
    %c5 = arith.constant 5 : index
    %c0_10 = arith.constant 0 : index
    %c0_11 = arith.constant 0 : index
    %35 = vector.load %arg3[%c5, %c0_10, %c0_11] : memref<9x1x256xf32, #tpu.memory_space<vmem>>, vector<1x1x256xf32>
    %36 = vector.shape_cast %35 : vector<1x1x256xf32> to vector<1x256xf32>
    %37 = vector.broadcast %36 : vector<1x256xf32> to vector<8x256xf32>
    %38 = arith.mulf %34, %37 : vector<8x256xf32>
    %39 = arith.addf %33, %38 : vector<8x256xf32>
    %c1 = arith.constant 1 : index
    %c0_12 = arith.constant 0 : index
    %c0_13 = arith.constant 0 : index
    %40 = vector.load %arg3[%c1, %c0_12, %c0_13] : memref<9x1x256xf32, #tpu.memory_space<vmem>>, vector<1x1x256xf32>
    %41 = vector.shape_cast %40 : vector<1x1x256xf32> to vector<1x256xf32>
    %42 = vector.broadcast %41 : vector<1x256xf32> to vector<8x256xf32>
    %43 = arith.mulf %12, %42 : vector<8x256xf32>
    %44 = arith.addf %39, %43 : vector<8x256xf32>
    %c32_i32_14 = arith.constant 32 : i32
    %45 = tpu.dynamic_rotate %12 by %c32_i32_14 dim 1 : vector<8x256xf32>, i32 -> vector<8x256xf32>
    %c0_15 = arith.constant 0 : index
    %c0_16 = arith.constant 0 : index
    %c0_17 = arith.constant 0 : index
    %46 = vector.load %arg3[%c0_15, %c0_16, %c0_17] : memref<9x1x256xf32, #tpu.memory_space<vmem>>, vector<1x1x256xf32>
    %47 = vector.shape_cast %46 : vector<1x1x256xf32> to vector<1x256xf32>
    %48 = vector.broadcast %47 : vector<1x256xf32> to vector<8x256xf32>
    %49 = arith.mulf %45, %48 : vector<8x256xf32>
    %50 = arith.addf %44, %49 : vector<8x256xf32>
    %c224_i32_18 = arith.constant 224 : i32
    %51 = tpu.dynamic_rotate %12 by %c224_i32_18 dim 1 : vector<8x256xf32>, i32 -> vector<8x256xf32>
    %c2 = arith.constant 2 : index
    %c0_19 = arith.constant 0 : index
    %c0_20 = arith.constant 0 : index
    %52 = vector.load %arg3[%c2, %c0_19, %c0_20] : memref<9x1x256xf32, #tpu.memory_space<vmem>>, vector<1x1x256xf32>
    %53 = vector.shape_cast %52 : vector<1x1x256xf32> to vector<1x256xf32>
    %54 = vector.broadcast %53 : vector<1x256xf32> to vector<8x256xf32>
    %55 = arith.mulf %51, %54 : vector<8x256xf32>
    %56 = arith.addf %50, %55 : vector<8x256xf32>
    %c7 = arith.constant 7 : index
    %c0_21 = arith.constant 0 : index
    %c0_22 = arith.constant 0 : index
    %57 = vector.load %arg3[%c7, %c0_21, %c0_22] : memref<9x1x256xf32, #tpu.memory_space<vmem>>, vector<1x1x256xf32>
    %58 = vector.shape_cast %57 : vector<1x1x256xf32> to vector<1x256xf32>
    %59 = vector.broadcast %58 : vector<1x256xf32> to vector<8x256xf32>
    %60 = arith.mulf %20, %59 : vector<8x256xf32>
    %61 = arith.addf %56, %60 : vector<8x256xf32>
    %c32_i32_23 = arith.constant 32 : i32
    %62 = tpu.dynamic_rotate %20 by %c32_i32_23 dim 1 : vector<8x256xf32>, i32 -> vector<8x256xf32>
    %c6 = arith.constant 6 : index
    %c0_24 = arith.constant 0 : index
    %c0_25 = arith.constant 0 : index
    %63 = vector.load %arg3[%c6, %c0_24, %c0_25] : memref<9x1x256xf32, #tpu.memory_space<vmem>>, vector<1x1x256xf32>
    %64 = vector.shape_cast %63 : vector<1x1x256xf32> to vector<1x256xf32>
    %65 = vector.broadcast %64 : vector<1x256xf32> to vector<8x256xf32>
    %66 = arith.mulf %62, %65 : vector<8x256xf32>
    %67 = arith.addf %61, %66 : vector<8x256xf32>
    %c224_i32_26 = arith.constant 224 : i32
    %68 = tpu.dynamic_rotate %20 by %c224_i32_26 dim 1 : vector<8x256xf32>, i32 -> vector<8x256xf32>
    %c8 = arith.constant 8 : index
    %c0_27 = arith.constant 0 : index
    %c0_28 = arith.constant 0 : index
    %69 = vector.load %arg3[%c8, %c0_27, %c0_28] : memref<9x1x256xf32, #tpu.memory_space<vmem>>, vector<1x1x256xf32>
    %70 = vector.shape_cast %69 : vector<1x1x256xf32> to vector<1x256xf32>
    %71 = vector.broadcast %70 : vector<1x256xf32> to vector<8x256xf32>
    %72 = arith.mulf %68, %71 : vector<8x256xf32>
    %73 = arith.addf %67, %72 : vector<8x256xf32>
    %c0_29 = arith.constant 0 : index
    %c0_30 = arith.constant 0 : index
    %c0_31 = arith.constant 0 : index
    %74 = vector.load %arg5[%c0_29, %c0_30, %c0_31] : memref<1x8x256xf32, #tpu.memory_space<vmem>>, vector<1x8x256xf32>
    %75 = vector.shape_cast %74 : vector<1x8x256xf32> to vector<8x256xf32>
    %76 = vector.shape_cast %73 : vector<8x256xf32> to vector<1x8x256xf32>
    tpu.vector_store %arg5[%c0_29, %c0_30, %c0_31], %76 {strides = array<i32>} : memref<1x8x256xf32, #tpu.memory_space<vmem>>, vector<1x8x256xf32>,
    return
  }
  func.func @transform_0(%arg0: i32, %arg1: i32) -> (i32, i32, i32) {
    %c0_i32 = arith.constant 0 : i32
    %c0_i32_0 = arith.constant 0 : i32
    %c0_i32_1 = arith.constant 0 : i32
    return %arg0, %c0_i32, %c0_i32_0 : i32, i32, i32
  }
  func.func @transform_1(%arg0: i32, %arg1: i32) -> (i32, i32, i32) {
    %c0_i32 = arith.constant 0 : i32
    %c0_i32_0 = arith.constant 0 : i32
    %c0_i32_1 = arith.constant 0 : i32
    %c0_i32_2 = arith.constant 0 : i32
    return %c0_i32, %c0_i32_0, %c0_i32_1 : i32, i32, i32
  }
  func.func @transform_2(%arg0: i32, %arg1: i32) -> (i32, i32) {
    %c0_i32 = arith.constant 0 : i32
    %c0_i32_0 = arith.constant 0 : i32
    %c0_i32_1 = arith.constant 0 : i32
    return %c0_i32, %c0_i32_0 : i32, i32
  }
  func.func @transform_3(%arg0: i32, %arg1: i32) -> (i32, i32, i32) {
    %c0_i32 = arith.constant 0 : i32
    %c0_i32_0 = arith.constant 0 : i32
    return %arg0, %arg1, %c0_i32 : i32, i32, i32
  }
}

</mosaic_0001>

<bundles_post_ra>
// kernel: tpu_custom_call.1
= control target key start
LH: loop header
LB: loop body
LE: loop exit
PB: predicated region body
PF: predicated region fallthrough
CT: control target
= control target key end

     0   :  { %8 = vsyncpa [#allocation3], 0  ;;  %s1015_s0 = inlined_call_operand.hbm [shape: f32[2,8,256], index: 0, kind: input, shape index: {}]   ;;  %s1016_s1 = inlined_call_operand.hbm [shape: f32[9,1,256], index: 1, kind: input, shape index: {}]   ;;  %s1017_s2 = inlined_call_operand.hbm [shape: f32[1,256], index: 2, kind: input, shape index: {}]   ;;  %s1018_s3 = inlined_call_operand.hbm [shape: f32[2,8,256], index: 3, kind: output, shape index: {}]  }
   0x1   :  { %10 = vsyncpa [#allocation3 + $0x1], 0 }
   0x2   :  { %11 = vsyncpa [#allocation6], 0 }
   0x3   :  { %12 = vsyncpa [#allocation4], 0 }
   0x4   :  { %14 = vsyncpa [#allocation4 + $0x1], 0  ;;  %s829_s12 = smov 0   ;;  %s831_s13 = smov 0  }
   0x5   :  { %s833_s14 = smov 0   ;;  %s835_s15 = smov 0  }
   0x6   :  { %s837_s16 = smov 0   ;;  %s839_s17 = smov 0  }
   0x7 LB: > { %s517_s18 = sadd.s32 4294967295, %s801_s17   ;;  %p519_p0 = scmp.ge.s32.totalorder %s801_s17, 1  ;;  %s801_s17 = sphi %s839_s17, %s20_s17   ;;  %s797_s16 = sphi %s837_s16, %s1028_s16   ;;  %s793_s15 = sphi %s835_s15, %s1027_s15   ;;  %s789_s14 = sphi %s833_s14, %s1026_s14   ;;  %s785_s13 = sphi %s831_s13, %s1025_s13   ;;  %s781_s12 = sphi %s829_s12, %s1024_s12  }
   0x8   : > { %p863_p1 = scmp.eq.s32.totalorder %s517_s18, 0  ;;  %p133_p2 = scmp.lt.s32.totalorder %s801_s17, 3 }
   0x9   : > { %s144_s22 = sshll.u32 %s1016_s1, 4  ;;  %s803_s24 = smov [#allocation5]   ;;  %s145_s22 = int_to_ptr.hbm [resolvable:$true] %s144_s22 }
   0xa   : > { %p871_p3 = pnand %p519_p0, %p133_p2  ;;  %s146_s25 = sshll.u32 %s803_s24, 4  ;;  %s147_s25 = int_to_ptr.vmem [resolvable:$true] %s146_s25 }
   0xb   : > { %p522_p6 = scmp.ge.s32.totalorder %s801_s17, 2  ;;  %s159_s28 = sshll.u32 %s1017_s2, 4  ;;  %s160_s28 = int_to_ptr.hbm [resolvable:$true] %s159_s28 }
   0xc   : > { %p550_p4 = pneg %p871_p3  ;;  %s804_s29 = smov 32  }
   0xd   : > { %s805_s30 = smov 2   ;;  %s806_s4 = smov [#allocation7]  }
   0xe   : > { %p551_p5 = pnand %p550_p4, %p863_p1  ;;  %s161_s5 = sshll.u32 %s806_s4, 4  ;;  %s162_s5 = int_to_ptr.vmem [resolvable:$true] %s161_s5 }
   0xf   : > { %s32_s6 = sadd.s32 1, %s797_s16  ;;  %s518_s7 = sadd.s32 4294967294, %s801_s17  }
  0x10   : > { %553 = dma.hbm_to_vmem [thread:$0]  (!%p551_p5), %s145_s22, 288, %s147_s25, [#allocation6], %s804_s29, %s804_s29, %s805_s30  }
  0x11   : > { %556 = dma.hbm_to_vmem [thread:$0]  (!%p551_p5), %s160_s28, 32, %s162_s5, [#allocation6]  }
  0x12   : > { %p34_p7 = scmp.ge.s32.totalorder %s32_s6, 2  ;;  %s39_s8 = sadd.s32 1, %s789_s14 }
  0x13   : > { %p46_p8 = scmp.ne.s32.totalorder %s789_s14, %s785_s13  ;;  %p47_p9 = scmp.eq.s32.totalorder %s801_s17, 0 }
  0x14   : > { %s1030_s6 = smov (%p34_p7, %s32_s6), 0  ;;  %p52_p10 = scmp.ne.s32.totalorder %s785_s13, %s781_s12 }
  0x15   : > { %s36_s9 = ssub.s32 %s797_s16, %s1030_s6  ;;  %p120_p11 = scmp.eq.s32.totalorder %s517_s18, 1 }
  0x16   : > { %p37_p12 = scmp.eq.s32.totalorder %s36_s9, 0  ;;  %p899_p13 = por %p863_p1, %p52_p10 }
  0x17   : > { %p903_p0 = por %p120_p11, %p46_p8  ;;  %p126_p2 = scmp.eq.s32.totalorder %s518_s7, 1 }
  0x18   : > { %s908_s20 = scalar_select %p37_p12, %s789_s14, %s39_s8  }
  0x19   : > { %p48_p4 = por %p47_p9, %p46_p8  ;;  %p910_p5 = por %p126_p2, %p52_p10 }
  0x1a   : > { %s172_s22 = sand.u32 1, %s789_s14   ;;  %s536_s18 = sshll.u32 %s797_s16, 4 }
  0x1b   : > { %p567_p7 = scmp.lt.s32.totalorder %s801_s17, 2  ;;  %s523_s24 = sshll.u32 %s172_s22, 4 }
  0x1c   : > { %s181_s27 = scalar_lea.hbm %s1015_s0, %s536_s18  ;;  %s176_s29 = scalar_lea.vmem [#allocation2], %s523_s24 }
  0x1d   : > { %s183_s28 = sshll.u32 %s181_s27, 4  ;;  %s185_s30 = sshll.u32 %s176_s29, 4  ;;  %s184_s28 = int_to_ptr.hbm [resolvable:$true] %s183_s28  ;;  %s186_s30 = int_to_ptr.vmem [resolvable:$true] %s185_s30 }
  0x1e   : > { %p558_p11 = pnand %p567_p7, %p48_p4  ;;  %s173_s4 = scalar_lea.sflag [#allocation3], %s172_s22 }
  0x1f   : > { %194 = sbr.rel (%p871_p3) target bundleno = 190 (0xbe), region = 32  ;;  %s923_s5 = sand.u32 (!%p871_p3), 1, %s785_s13  }
  0x20   : > { %560 = dma.hbm_to_vmem [thread:$0]  (!%p558_p11), %s184_s28, 256, %s186_s30, %s173_s4  }
  0x21   : > { %s527_s7 = sshll.u32 (!%p871_p3), %s923_s5, 4  ;;  %s197_s8 = scalar_lea.sflag (!%p871_p3), [#allocation3], %s923_s5 }
  0x22   : > { %s200_s9 = scalar_lea.vmem (!%p871_p3), [#allocation2], %s527_s7 }
  0x24   : > { %768 = dma.done.wait (%p899_p13), %s197_s8, 256  }
  0x25   : > { %770 = vsyncadd (%p899_p13), %s197_s8, 4294967040 }
  0x26   : > { %772 = dma.done.wait (%p863_p1), [#allocation6], 320  }
  0x27   : > { %774 = vsyncadd (%p863_p1), [#allocation6], 4294966976  ;;  %v236_v0 = vlaneseq  ;;  %v234_v2 = vld [vmem:[%s200_s9] sm:$0xff]  ;;  %s807_s23 = smov 96   ;;  %s808_s22 = smov 32   ;;  %v235_v5 = vld [vmem:[%s200_s9 + $0x8] sm:$0xff] }
  0x28   : > { %289 = vrot.lane.b32.xlu1 %v234_v2, %s807_s23  ;;  %269 = vrot.lane.b32.xlu0 %v234_v2, %s808_s22  ;;  %v239_v3 = vrot.slane %v234_v2, 7  ;;  %v240_v6 = vrot.slane %v235_v5, 7  ;;  %v246_v8 = vrot.slane %v234_v2, 1  ;;  %v247_v9 = vrot.slane %v235_v5, 1  ;;  %v253_v13 = vld [vmem:[#allocation5 + $0x8] sm:$0x3] }
  0x29   : > { %v237_v1 = vshrl.u32 %v236_v0, 7  ;;  %v255_v16 = vperm.slane %v253_v13, 0  ;;  %v256_v17 = vperm.slane %v253_v13, 1  ;;  %v261_v18 = vld [vmem:[#allocation7] sm:$0x3]  ;;  %v945_v19 = vand.u32 127, %v236_v0 }
  0x2a   : > { %v279_v20 = vld [vmem:[#allocation5 + $0x6] sm:$0x3]  ;;  %v308_v21 = vld [vmem:[#allocation5 + $0x2] sm:$0x3]  ;;  %v263_v24 = vperm.slane %v261_v18, 0  ;;  %v264_v25 = vperm.slane %v261_v18, 1 }
  0x2b   : > { %vm238_vm0 = vcmp.eq.s32.totalorder %v237_v1, 0  ;;  %vm245_vm1 = vcmp.eq.s32.totalorder %v237_v1, 7  ;;  %v260_v23 = vmul.f32 %v256_v17, %v235_v5  ;;  %v259_v26 = vmul.f32 %v255_v16, %v234_v2  ;;  %v297_v27 = vld [vmem:[#allocation5 + $0xa] sm:$0x3]  ;;  %v324_v32 = vld [vmem:[#allocation5] sm:$0x3] }
  0x2c   : > { %v243_v4 = vsel %vm238_vm0, 0.0, %v239_v3  ;;  %v244_v7 = vsel %vm238_vm0, 0.0, %v240_v6  ;;  %v937_v10 = vsel %vm245_vm1, 0.0, %v246_v8  ;;  %v940_v11 = vsel %vm245_vm1, 0.0, %v247_v9  ;;  %v352_v43 = vld [vmem:[#allocation5 + $0xe] sm:$0x3] }
  0x2d   : > { %318 = vrot.lane.b32.xlu2 %v243_v4, %s808_s22  ;;  %vm293_vm2 = vcmp.lt.s32.totalorder %v945_v19, 96  ;;  %v281_v28 = vperm.slane %v279_v20, 0  ;;  %v282_v29 = vperm.slane %v279_v20, 1  ;;  %v311_v30 = vperm.slane %v308_v21, 1  ;;  %v341_v50 = vld [vmem:[#allocation5 + $0x4] sm:$0x3] }
  0x2e   : > { %v310_v31 = vperm.slane %v308_v21, 0  ;;  %vm275_vm3 = vcmp.lt.s32.totalorder %v945_v19, 32  ;;  %v299_v33 = vperm.slane %v297_v27, 0  ;;  %v300_v34 = vperm.slane %v297_v27, 1  ;;  %v369_v16 = vld [vmem:[#allocation5 + $0xc] sm:$0x3] }
  0x2f   : > { %v268_v36 = vadd.f32 %v264_v25, %v260_v23  ;;  %v267_v38 = vadd.f32 %v263_v24, %v259_v26  ;;  %v315_v46 = vmul.f32 %v311_v30, %v244_v7  ;;  %v326_v48 = vperm.slane %v324_v32, 0  ;;  %v386_v17 = vld [vmem:[#allocation5 + $0x10] sm:$0x3]  ;;  %s537_s19 = sshll.u32 %s793_s15, 4  ;;  %s233_s15 = scalar_lea.vmem [#allocation8], %s527_s7 }
  0x30   : > { %291 = vrot.lane.b32.xlu1 %v235_v5, %s807_s23  ;;  %271 = vrot.lane.b32.xlu0 %v235_v5, %s808_s22  ;;  %v314_v47 = vmul.f32 %v310_v31, %v243_v4  ;;  %v327_v49 = vperm.slane %v324_v32, 1  ;;  %v355_v56 = vperm.slane %v352_v43, 1  ;;  %v354_v57 = vperm.slane %v352_v43, 0  ;;  %s412_s24 = scalar_lea.hbm %s1018_s3, %s537_s19  ;;  %s414_s25 = sshll.u32 %s233_s15, 4  ;;  %s415_s25 = int_to_ptr.vmem [resolvable:$true] %s414_s25 }
  0x31   : > { %v343_v62 = vperm.slane %v341_v50, 0  ;;  %v344_v63 = vperm.slane %v341_v50, 1  ;;  %v371_v21 = vperm.slane %v369_v16, 0  ;;  %v389_v24 = vperm.slane %v386_v17, 1  ;;  %s416_s26 = sshll.u32 %s412_s24, 4  ;;  %s399_s27 = scalar_lea.sflag [#allocation4], %s923_s5  ;;  %s417_s26 = int_to_ptr.hbm [resolvable:$true] %s416_s26 }
  0x32   : > { %v359_v6 = vmul.f32 %v355_v56, %v940_v11  ;;  %s729_s28 = sshra.s32 %s417_s26, 4  ;;  %s735_s7 = scalar_lea.hbm %s1018_s3, 32  ;;  %s730_s28 = int_to_ptr.hbm [resolvable:$true] %s729_s28 }
  0x33   : > { %s731_s29 = scalar_lea.hbm %s730_s28, 16  ;;  %p736_p9 = scmp.lt.s32.totalorder %s730_s28, %s1018_s3 }
  0x34   : > { %p732_p1 = scmp.ne.s32.totalorder %s730_s28, %s731_s29  ;;  %p737_p10 = scmp.lt.s32.totalorder %s735_s7, %s731_s29 }
  0x35   : > { %320 = vrot.lane.b32.xlu2 %v244_v7, %s808_s22 }
  0x36   : > { %p733_p3 = pnand %p732_p1, %p903_p0  ;;  %p738_p12 = por %p737_p10, %p736_p9 }
  0x38   : > { %336 = vrot.lane.b32.xlu1 %v244_v7, %s807_s23  ;;  %334 = vrot.lane.b32.xlu0 %v243_v4, %s807_s23  ;;  %v358_v7 = vmul.f32 %v354_v57, %v937_v10  ;;  %p734_p8 = pneg %p733_p3 }
  0x3a   : > { %p739_p13 = pnand %p738_p12, %p734_p8 }
  0x3d   : > { %362 = vrot.lane.b32.xlu2 %v937_v10, %s808_s22 }
  0x40   : > { %364 = vrot.lane.b32.xlu0 %v940_v11, %s808_s22  ;;  %379 = vrot.lane.b32.xlu1 %v937_v10, %s807_s23  ;;  %v388_v10 = vperm.slane %v386_v17, 0 }
  0x45   : > { %381 = vrot.lane.b32.xlu2 %v940_v11, %s807_s23 }
  0x87   : > { %v319_v12 = vpop.permute.xlu2 %318 }
  0x8f   : > { %v321_v22 = vpop.permute.xlu2 %320 }
  0x90   : > { %v322_v58 = vsel %vm275_vm3, %v319_v12, %v321_v22  ;;  %v323_v59 = vsel %vm275_vm3, %v321_v22, %v319_v12  ;;  %v372_v22 = vperm.slane %v369_v16, 1 }
  0x91   : > { %v330_v0 = vmul.f32 %v326_v48, %v323_v59  ;;  %v331_v1 = vmul.f32 %v327_v49, %v322_v58 }
  0x97   : > { %v363_v55 = vpop.permute.xlu2 %362 }
  0x9a   : > { %v290_v14 = vpop.permute.xlu1 %289  ;;  %v270_v15 = vpop.permute.xlu0 %269 }
  0x9f   : > { %v382_v25 = vpop.permute.xlu2 %381 }
  0xa2   : > { %v292_v35 = vpop.permute.xlu1 %291  ;;  %v272_v37 = vpop.permute.xlu0 %271 }
  0xa3   : > { %v294_v39 = vsel %vm293_vm2, %v290_v14, %v292_v35  ;;  %v295_v40 = vsel %vm293_vm2, %v292_v35, %v290_v14  ;;  %v276_v41 = vsel %vm275_vm3, %v270_v15, %v272_v37  ;;  %v277_v42 = vsel %vm275_vm3, %v272_v37, %v270_v15 }
  0xa4   : > { %v285_v44 = vmul.f32 %v281_v28, %v277_v42  ;;  %v286_v45 = vmul.f32 %v282_v29, %v276_v41  ;;  %v303_v51 = vmul.f32 %v299_v33, %v294_v39  ;;  %v304_v52 = vmul.f32 %v300_v34, %v295_v40 }
  0xa6   : > { %v287_v53 = vadd.f32 %v285_v44, %v267_v38  ;;  %v288_v54 = vadd.f32 %v286_v45, %v268_v36 }
  0xa8   : > { %v305_v60 = vadd.f32 %v303_v51, %v287_v53  ;;  %v306_v61 = vadd.f32 %v304_v52, %v288_v54 }
  0xaa   : > { %v337_v2 = vpop.permute.xlu1 %336  ;;  %v317_v3 = vadd.f32 %v315_v46, %v306_v61  ;;  %v335_v4 = vpop.permute.xlu0 %334  ;;  %v316_v5 = vadd.f32 %v314_v47, %v305_v60 }
  0xab   : > { %v338_v8 = vsel %vm293_vm2, %v335_v4, %v337_v2  ;;  %v339_v9 = vsel %vm293_vm2, %v337_v2, %v335_v4 }
  0xac   : > { %v332_v12 = vadd.f32 %v330_v0, %v316_v5  ;;  %v333_v13 = vadd.f32 %v331_v1, %v317_v3  ;;  %v347_v14 = vmul.f32 %v343_v62, %v338_v8  ;;  %v348_v15 = vmul.f32 %v344_v63, %v339_v9 }
  0xae   : > { %v349_v18 = vadd.f32 %v347_v14, %v332_v12  ;;  %v350_v20 = vadd.f32 %v348_v15, %v333_v13 }
  0xb0   : > { %v360_v11 = vadd.f32 %v358_v7, %v349_v18  ;;  %v361_v23 = vadd.f32 %v359_v6, %v350_v20 }
  0xb2   : > { %v365_v26 = vpop.permute.xlu0 %364  ;;  %v380_v27 = vpop.permute.xlu1 %379 }
  0xb3   : > { %v366_v28 = vsel %vm275_vm3, %v363_v55, %v365_v26  ;;  %v367_v29 = vsel %vm275_vm3, %v365_v26, %v363_v55  ;;  %v383_v30 = vsel %vm293_vm2, %v380_v27, %v382_v25  ;;  %v384_v31 = vsel %vm293_vm2, %v382_v25, %v380_v27 }
  0xb4   : > { %v375_v32 = vmul.f32 %v371_v21, %v367_v29  ;;  %v376_v33 = vmul.f32 %v372_v22, %v366_v28  ;;  %v392_v34 = vmul.f32 %v388_v10, %v383_v30  ;;  %v393_v35 = vmul.f32 %v389_v24, %v384_v31 }
  0xb6   : > { %v377_v36 = vadd.f32 %v375_v32, %v360_v11  ;;  %v378_v37 = vadd.f32 %v376_v33, %v361_v23 }
  0xb8   : > { %v394_v38 = vadd.f32 %v392_v34, %v377_v36  ;;  %v395_v39 = vadd.f32 %v393_v35, %v378_v37 }
  0xba   : > { %396 = vst [vmem:[%s233_s15] sm:$0xff] %v394_v38 }
  0xbb   : > { %397 = vst [vmem:[%s233_s15 + $0x8] sm:$0xff] %v395_v39 }
  0xbc   : > { %742 = shalt.err (!%p739_p13)
}
  0xbd   : > { %548 = dma.vmem_to_hbm [thread:$0]  (%p903_p0), %s415_s25, 256, %s417_s26, %s399_s27  }
  0xbe PF: > { %s428_s5 = sand.u32 1, %s781_s12   ;;  %p562_p2 = pnand %p522_p6, %p910_p5 }
  0xbf   : > { %s429_s23 = scalar_lea.sflag [#allocation4], %s428_s5 }
  0xc0   : > { %p563_p4 = pneg %p562_p2 }
  0xc2   : > { %776 = dma.done.wait (%p563_p4), %s429_s23, 256  }
  0xc3   : > { %778 = vsyncadd (%p563_p4), %s429_s23, 4294967040  ;;  %s20_s17 = sadd.s32 1, %s801_s17   ;;  %s1024_s12 = smov %s785_s13 }
  0xc4   : > { %p17_p7 = scmp.ge.s32.totalorder %s20_s17, 4   ;;  %s1025_s13 = smov %s789_s14 }
  0xc5   : > { %s1026_s14 = smov %s908_s20  ;;  %s1027_s15 = smov %s797_s16 }
  0xc6   : > { %s1028_s16 = smov %s1030_s6  ;;  %19 = sbr.rel (!%p17_p7) target bundleno = 7 (0x7), region = 93 }
  0xcb   :  { %435 = vsyncpa [#allocation3], 1 }
  0xcc   :  { %437 = vsyncpa [#allocation3 + $0x1], 1 }
  0xcd   :  { %438 = vsyncpa [#allocation6], 1 }
  0xce   :  { %439 = vsyncpa [#allocation4], 1 }
  0xcf   :  { %441 = vsyncpa [#allocation4 + $0x1], 1 }

</bundles_post_ra>
